<compile_context>
chip_gen: v7x
topology: tpu7x:2x2x1
jax: 0.10.0
libtpu: 0.0.40
codegen_flags: <defaults>
</compile_context>

<pallas_src>
import jax
import jax.numpy as jnp
from jax.experimental import pallas as pl
from jax.experimental.pallas import tpu as pltpu


def _pos_emb_add_kernel(x_ref, pe_ref, o_ref):
    # x_ref/o_ref: (tB, tF) tiles; pe_ref: (1, tF) tile, broadcast over sublanes.
    o_ref[...] = (x_ref[...] + pe_ref[...]).astype(o_ref.dtype)


def _tpu_params():
    """Per-generation knobs: (target_tile_bytes, vmem_limit_bytes, num_cores)."""
    vmem_cap = 128 * 1024 * 1024  # fallback: v5e / v6e physical VMEM
    num_cores = 1
    try:
        info = pltpu.get_tpu_info()
        vmem_cap = int(getattr(info, "vmem_capacity_bytes", vmem_cap))
        num_cores = int(
            getattr(info, "num_cores",
                    getattr(info, "tensorcores_per_chip", num_cores)))
    except Exception:
        pass
    # Tile target: big enough to amortize the ~0.35us/step overhead on v7x's
    # 3.2 TB/s HBM (6-8 MiB), while 4 double-buffered tiles + pe still fit.
    target_tile = min(8 * 1024 * 1024, max(2 * 1024 * 1024, vmem_cap // 10))
    # Scoped VMEM limit: leave ~25% headroom under physical capacity.
    vmem_limit = max(32 * 1024 * 1024, min(96 * 1024 * 1024, (vmem_cap * 3) // 4))
    return target_tile, vmem_limit, max(1, num_cores)


def _choose_tiles(B: int, F: int, elt_bytes: int, target_tile_bytes: int):
    """Pick (tB, tF): lane-dense (tF % 128 == 0 or tF == F), sublane tile
    aligned to the dtype's native packed row count, ~target_tile_bytes."""
    sub = max(8, 32 // max(1, elt_bytes))  # f32:8, bf16:16, int8/fp8:32
    tf_cap = max(128, ((target_tile_bytes // (sub * elt_bytes)) // 128) * 128)
    tF = F if F <= tf_cap else tf_cap
    if B <= sub:
        tB = B  # equals the full dim -> layout-legal even if < sub
    else:
        want_rows = max(sub, ((target_tile_bytes // (tF * elt_bytes)) // sub) * sub)
        tB = max(sub, min((B // sub) * sub, want_rows))
    return tB, tF


def positional_embedding_forward(x: jax.Array, pos_emb: jax.Array,
                                 *, tiles=None, alias_input: bool = False
                                 ) -> jax.Array:
    """x: (B, T, E), pos_emb: (1, T, E) -> (B, T, E) = x + pos_emb."""
    B, T, E = x.shape
    assert pos_emb.shape == (1, T, E)
    F = T * E
    elt_bytes = jnp.dtype(x.dtype).itemsize

    # Free layout plumbing: lane-dense 2-D views + dtype-matched pos_emb.
    x2 = x.reshape(B, F)
    pe2 = pos_emb.astype(x.dtype).reshape(1, F)

    target_tile, vmem_limit, num_cores = _tpu_params()
    if tiles is None:
        tB, tF = _choose_tiles(B, F, elt_bytes, target_tile)
        # Megacore (v7x): guarantee >= num_cores blocks so both TCs get work.
        if num_cores > 1 and pl.cdiv(F, tF) * pl.cdiv(B, tB) < num_cores and F > 128:
            tF = max(128, ((pl.cdiv(F, num_cores) + 127) // 128) * 128)
    else:
        tB, tF = tiles

    grid = (pl.cdiv(F, tF), pl.cdiv(B, tB))

    cost = pl.CostEstimate(
        flops=B * F,
        transcendentals=0,
        bytes_accessed=(2 * B + 1) * F * elt_bytes,  # read x + pe, write out
    )

    grid_spec = pltpu.PrefetchScalarGridSpec(
        num_scalar_prefetch=0,
        grid=grid,
        in_specs=[
            # x: one (tB, tF) tile per (f, b) step.
            pl.BlockSpec((tB, tF), lambda f, b: (b, f)),
            # pos_emb: index ignores b -> tile stays VMEM-resident across the
            # batch axis (no per-batch re-DMA of the constant).
            pl.BlockSpec((1, tF), lambda f, b: (0, f)),
        ],
        out_specs=pl.BlockSpec((tB, tF), lambda f, b: (b, f)),
    )

    out2 = pl.pallas_call(
        _pos_emb_add_kernel,
        out_shape=jax.ShapeDtypeStruct((B, F), x.dtype),
        grid_spec=grid_spec,
        compiler_params=pltpu.CompilerParams(
            # Elementwise, no block revisits -> both axes shardable (megacore).
            dimension_semantics=("parallel", "parallel"),
            vmem_limit_bytes=vmem_limit,
        ),
        cost_estimate=cost,
        input_output_aliases=({0: 0} if alias_input else {}),
    )(x2, pe2)

    return out2.reshape(B, T, E)


class PositionalEmbedding:
    """JAX/Pallas port of the PyTorch PositionalEmbedding module (forward only)."""

    def __init__(self, nbr_token: int, embedding_size: int, key: jax.Array,
                 dtype=jnp.float32):
        self.nbr_token = nbr_token
        self.embedding_size = embedding_size
        # torch.randn -> standard normal init, deterministic via PRNGKey.
        # Stored in the activation dtype to avoid mixed-dtype traffic.
        self.positional_embedding = jax.random.normal(
            key, (1, nbr_token, embedding_size), dtype=jnp.float32
        ).astype(dtype)

    def __call__(self, x: jax.Array) -> jax.Array:
        return positional_embedding_forward(x, self.positional_embedding)


def _check(out, x, pe, tol):
    ref = x + pe.astype(x.dtype)
    assert out.shape == x.shape and out.dtype == x.dtype
    assert jnp.allclose(out.astype(jnp.float32), ref.astype(jnp.float32),
                        atol=tol, rtol=tol), "mismatch vs reference"


if __name__ == "__main__":
    key = jax.random.PRNGKey(0)
    k_param, k_x, k_x2, k_x3, k_p2, k_p3 = jax.random.split(key, 6)

    # --- Test 1: module path, small f32 single-tile case ------------------
    batch_size, nbr_token, embedding_size = 2, 8, 32
    module = PositionalEmbedding(nbr_token, embedding_size, k_param)
    x = jax.random.normal(
        k_x, (batch_size, nbr_token, embedding_size), dtype=jnp.float32)
    out = jax.block_until_ready(module(x))
    _check(out, x, module.positional_embedding, 1e-6)

    # --- Test 2: f32, ragged batch and feature blocks (B>tB, F>tF, F%128!=0)
    B2, T2, E2 = 18, 10, 40  # F = 400 -> blocks of 128 with a ragged tail
    x2 = jax.random.normal(k_x2, (B2, T2, E2), dtype=jnp.float32)
    pe_2 = jax.random.normal(k_p2, (1, T2, E2), dtype=jnp.float32)
    out2 = jax.block_until_ready(
        positional_embedding_forward(x2, pe_2, tiles=(8, 128)))
    _check(out2, x2, pe_2, 1e-6)

    # --- Test 3: bf16, multi-tile with dtype-native (16-row) sublane tiles -
    B3, T3, E3 = 32, 16, 64  # F = 1024
    x3 = jax.random.normal(k_x3, (B3, T3, E3), dtype=jnp.float32).astype(jnp.bfloat16)
    pe_3 = jax.random.normal(k_p3, (1, T3, E3), dtype=jnp.float32).astype(jnp.bfloat16)
    out3 = jax.block_until_ready(
        positional_embedding_forward(x3, pe_3, tiles=(16, 256)))
    _check(out3, x3, pe_3, 1e-2)

    print("KERNEL_OK")
</pallas_src>

<mosaic_0001>
module attributes {stable_mosaic.version = 11 : i64} {
  func.func @_pos_emb_add_kernel(%arg0: i32, %arg1: i32, %arg2: memref<2x256xf32, #tpu.memory_space<vmem>>, %arg3: memref<1x256xf32, #tpu.memory_space<vmem>>, %arg4: memref<2x256xf32, #tpu.memory_space<vmem>>) attributes {dimension_semantics = [#tpu.dimension_semantics<parallel>, #tpu.dimension_semantics<parallel>], iteration_bounds = array<i64: 1, 1>, scalar_prefetch = 0 : i64, scratch_operands = 0 : i64, tpu.core_type = #tpu.core_type<tc>, window_params = [{transform_indices = @transform_0, window_bounds = array<i64: 2, 256>}, {transform_indices = @transform_1, window_bounds = array<i64: 1, 256>}, {transform_indices = @transform_2, window_bounds = array<i64: 2, 256>}]} {
    %c0 = arith.constant 0 : index
    %c0_0 = arith.constant 0 : index
    %0 = vector.load %arg2[%c0, %c0_0] : memref<2x256xf32, #tpu.memory_space<vmem>>, vector<2x256xf32>
    %c0_1 = arith.constant 0 : index
    %c0_2 = arith.constant 0 : index
    %1 = vector.load %arg3[%c0_1, %c0_2] : memref<1x256xf32, #tpu.memory_space<vmem>>, vector<1x256xf32>
    %2 = vector.broadcast %1 : vector<1x256xf32> to vector<2x256xf32>
    %3 = arith.addf %0, %2 : vector<2x256xf32>
    %c0_3 = arith.constant 0 : index
    %c0_4 = arith.constant 0 : index
    %4 = vector.load %arg4[%c0_3, %c0_4] : memref<2x256xf32, #tpu.memory_space<vmem>>, vector<2x256xf32>
    tpu.vector_store %arg4[%c0_3, %c0_4], %3 {strides = array<i32>} : memref<2x256xf32, #tpu.memory_space<vmem>>, vector<2x256xf32>,
    return
  }
  func.func @transform_0(%arg0: i32, %arg1: i32) -> (i32, i32) {
    %c0_i32 = arith.constant 0 : i32
    return %arg1, %arg0 : i32, i32
  }
  func.func @transform_1(%arg0: i32, %arg1: i32) -> (i32, i32) {
    %c0_i32 = arith.constant 0 : i32
    %c0_i32_0 = arith.constant 0 : i32
    return %c0_i32, %arg0 : i32, i32
  }
  func.func @transform_2(%arg0: i32, %arg1: i32) -> (i32, i32) {
    %c0_i32 = arith.constant 0 : i32
    return %arg1, %arg0 : i32, i32
  }
}

</mosaic_0001>

<bundles_post_ra>
// kernel: tpu_custom_call.1
= control target key start
LH: loop header
LB: loop body
LE: loop exit
PB: predicated region body
PF: predicated region fallthrough
CT: control target
= control target key end

     0   :  { %7 = vsyncpa [#allocation3], 0  ;;  %s205_s0 = inlined_call_operand.hbm [shape: f32[2,256], index: 0, kind: input, shape index: {}]   ;;  %s206_s1 = inlined_call_operand.hbm [shape: f32[1,256], index: 1, kind: input, shape index: {}]   ;;  %s207_s2 = inlined_call_operand.hbm [shape: f32[2,256], index: 2, kind: output, shape index: {}]  }
   0x1   :  { %8 = vsyncpa [#allocation6], 0 }
   0x2   :  { %9 = vsyncpa [#allocation4], 0  ;;  %s150_s9 = smov [#allocation2]   ;;  %s151_s11 = smov [#allocation5]  }
   0x3   :  { %s16_s10 = sshll.u32 %s150_s9, 4  ;;  %s26_s12 = sshll.u32 %s151_s11, 4  ;;  %s17_s10 = int_to_ptr.vmem [resolvable:$true] %s16_s10  ;;  %s27_s12 = int_to_ptr.vmem [resolvable:$true] %s26_s12 }
   0x4   :  { %s78_s15 = scalar_lea.hbm %s205_s0, 64 }
   0x5   :  { %p79_p0 = scmp.ne.s32.totalorder %s205_s0, %s78_s15  ;;  %p82_p1 = scmp.lt.u32.totalorder %s78_s15, %s205_s0 }
   0x7   :  { %p84_p2 = pnand %p82_p1, %p79_p0 }
   0x9   :  { %87 = shalt.err (!%p84_p2)
}
   0xa   :  { %s88_s20 = scalar_lea.vmem %s17_s10, 64  ;;  %p93_p4 = scmp.lt.s32.totalorder %s17_s10, %s17_s10 }
   0xb   :  { %p89_p3 = scmp.ne.s32.totalorder %s17_s10, %s88_s20  ;;  %p94_p5 = scmp.lt.s32.totalorder %s88_s20, %s88_s20 }
   0xd   :  { %p95_p6 = por %p94_p5, %p93_p4 }
   0xf   :  { %p96_p7 = pnand %p95_p6, %p89_p3 }
  0x11   :  { %99 = shalt.err (!%p96_p7)
}
  0x12   :  { %19 = dma.hbm_to_vmem [thread:$0]  %s205_s0, 64, %s17_s10, [#allocation3]  }
  0x13   :  { %s100_s25 = scalar_lea.hbm %s206_s1, 32 }
  0x14   :  { %p101_p8 = scmp.ne.s32.totalorder %s206_s1, %s100_s25  ;;  %p104_p9 = scmp.lt.u32.totalorder %s100_s25, %s206_s1 }
  0x16   :  { %p106_p10 = pnand %p104_p9, %p101_p8 }
  0x18   :  { %109 = shalt.err (!%p106_p10)
}
  0x19   :  { %s110_s30 = scalar_lea.vmem %s27_s12, 32  ;;  %p115_p12 = scmp.lt.s32.totalorder %s27_s12, %s27_s12 }
  0x1a   :  { %p111_p11 = scmp.ne.s32.totalorder %s27_s12, %s110_s30  ;;  %p116_p13 = scmp.lt.s32.totalorder %s110_s30, %s110_s30 }
  0x1c   :  { %p117_p0 = por %p116_p13, %p115_p12 }
  0x1e   :  { %p118_p1 = pnand %p117_p0, %p111_p11 }
  0x20   :  { %121 = shalt.err (!%p118_p1)
}
  0x21   :  { %29 = dma.hbm_to_vmem [thread:$0]  %s206_s1, 32, %s27_s12, [#allocation6]  }
  0x22   :  { %144 = dma.done.wait [#allocation3], 64  }
  0x23   :  { %145 = vsyncadd [#allocation3], 4294967232 }
  0x24   :  { %146 = dma.done.wait [#allocation6], 32  }
  0x25   :  { %147 = vsyncadd [#allocation6], 4294967264  ;;  %v39_v0 = vlaneseq  ;;  %v152_v1 = vmov 1983009808   ;;  %v37_v7 = vld [vmem:[#allocation5] sm:$0x3] }
  0x26   :  { %v49_v2 = vunpack.c.l.s4 %v152_v1  ;;  %v36_v12 = vld [vmem:[#allocation2] sm:$0xf]  ;;  %s153_s4 = smov [#allocation7]  }
  0x27   :  { %v40_v3 = vshrl.u32 %v39_v0, 7  ;;  %s64_s5 = sshll.u32 %s153_s4, 4  ;;  %s65_s5 = int_to_ptr.vmem [resolvable:$true] %s64_s5 }
  0x28   :  { %v50_v6 = vunpack.c.0.s8 %v49_v2  ;;  %s122_s1 = scalar_lea.vmem %s65_s5, 64  ;;  %p127_p3 = scmp.lt.s32.totalorder %s65_s5, %s65_s5 }
  0x29   :  { %v41_v4 = vsub.s32 0, %v40_v3  ;;  %v45_v5 = vsub.s32 1, %v40_v3  ;;  %p123_p2 = scmp.ne.s32.totalorder %s65_s5, %s122_s1  ;;  %p128_p4 = scmp.lt.s32.totalorder %s122_s1, %s122_s1 }
  0x2a   :  { %v53_v10 = vsub.s32 %v50_v6, %v40_v3 }
  0x2b   :  { %v42_v8 = vrot.slane %v37_v7, %v41_v4  ;;  %v46_v9 = vrot.slane %v37_v7, %v45_v5  ;;  %p129_p5 = por %p128_p4, %p127_p3 }
  0x2d   :  { %v47_v11 = vcombine.low %v42_v8, %v46_v9  ;;  %p130_p6 = pnand %p129_p5, %p123_p2 }
  0x2f   :  { %v54_v13 = vrot.slane %v47_v11, %v53_v10 }
  0x31   :  { %v56_v14 = vadd.f32 %v54_v13, %v36_v12 }
  0x33   :  { %57 = vst [vmem:[#allocation7] sm:$0xf] %v56_v14 }
  0x34   :  { %133 = shalt.err (!%p130_p6)
}
  0x35   :  { %s134_s8 = scalar_lea.hbm %s207_s2, 64 }
  0x36   :  { %p135_p7 = scmp.ne.s32.totalorder %s207_s2, %s134_s8  ;;  %p138_p8 = scmp.lt.u32.totalorder %s134_s8, %s207_s2 }
  0x38   :  { %p140_p9 = pnand %p138_p8, %p135_p7 }
  0x3a   :  { %143 = shalt.err (!%p140_p9)
}
  0x3b   :  { %67 = dma.vmem_to_hbm [thread:$0]  %s65_s5, 64, %s207_s2, [#allocation4]  }
  0x3c   :  { %148 = dma.done.wait [#allocation4], 64  }
  0x3d   :  { %149 = vsyncadd [#allocation4], 4294967232 }
  0x3e   :  { %71 = vsyncpa [#allocation3], 1 }
  0x3f   :  { %72 = vsyncpa [#allocation6], 1 }
  0x40   :  { %73 = vsyncpa [#allocation4], 1 }

</bundles_post_ra>
